<compile_context>
chip_gen: v5e
topology: v5e:2x2
jax: 0.10.0
libtpu: 0.0.40
codegen_flags: <defaults>
</compile_context>

<pallas_src>
import jax
import jax.numpy as jnp
from jax.experimental import pallas as pl
from jax.experimental.pallas import tpu as pltpu


def moe_kernel(flags_ref,   # SMEM  (n_tiles * E,) int32   scalar-prefetched skip flags
               x_ref,       # VMEM  (tm, in_dim)           token tile
               w_ref,       # VMEM  (1, in_dim, tn)        current expert's weight tile
               gate_ref,    # VMEM  (1, tm, 1)  f32        current expert's gate column
               bias_ref,    # VMEM  (tm, tn)    f32        hoisted bias term (D @ B)
               y_ref,       # VMEM  (tm, tn)               output tile
               acc_ref):    # VMEM  (tm, tn)    f32        scratch accumulator
    n = pl.program_id(0)
    e = pl.program_id(2)
    num_e = pl.num_programs(2)

    # Init accumulator at the start of the expert (reduction) loop.
    @pl.when(e == 0)
    def _():
        acc_ref[...] = jnp.zeros_like(acc_ref)

    # Skip MXU work entirely if no row in this tile selected this expert.
    active = flags_ref[n * num_e + e]

    @pl.when(active != 0)
    def _():
        expert_out = jnp.dot(x_ref[...], w_ref[0],
                             preferred_element_type=jnp.float32)   # (tm, tn) f32
        acc_ref[...] += gate_ref[0] * expert_out                   # gate col is (tm, 1) f32

    # Finalize: add hoisted bias term, cast once, write output tile.
    @pl.when(e == num_e - 1)
    def _():
        y_ref[...] = (acc_ref[...] + bias_ref[...]).astype(y_ref.dtype)


def _round_up(x, m):
    return ((x + m - 1) // m) * m


def moe_forward(X, G, W, B, selection_size):
    """Gating (softmax + top-k + normalize, in f32) in plain JAX; the expert
    matmuls + gated accumulation + bias run in the Pallas kernel."""
    N, in_dim = X.shape
    E = G.shape[1]
    out_dim = W.shape[2]
    out_dtype = X.dtype

    # --- gating in f32 (matches torch.softmax / torch.topk / normalization) ---
    # Note: top_k tie-breaking order may differ from torch.topk for exact ties.
    raw_weights = jax.nn.softmax(G.astype(jnp.float32), axis=1)        # (N, E)
    top_w, top_idx = jax.lax.top_k(raw_weights, selection_size)        # (N, S)
    norm_w = top_w / jnp.sum(top_w, axis=1, keepdims=True)             # (N, S)

    # Dense (N, E) gate matrix in f32 (exact zeros for unselected experts).
    dense_gate = jnp.zeros((N, E), jnp.float32)
    dense_gate = dense_gate.at[jnp.arange(N)[:, None], top_idx].set(norm_w)

    # Bias hoisted out of the per-expert loop:  sum_e D[:,e] * b_e  ==  D @ B.
    bias_contrib = dense_gate @ B.astype(jnp.float32)                  # (N, out_dim) f32

    # --- tile sizes & padding ---
    sublane = 8 if jnp.dtype(out_dtype).itemsize >= 4 else 16
    tm = _round_up(N, sublane) if N <= 256 else 256
    N_pad = _round_up(N, tm)
    tn = out_dim if out_dim <= 512 else 512                            # 512 = lcm-friendly, 256-aligned
    out_pad = _round_up(out_dim, tn)

    def pad_to(a, shape):
        return jnp.pad(a, [(0, s - d) for s, d in zip(shape, a.shape)])

    Xp = pad_to(X, (N_pad, in_dim))
    Wp = pad_to(W, (E, in_dim, out_pad))
    gate_p = pad_to(dense_gate, (N_pad, E))                            # padded rows -> zero gates
    bias_p = pad_to(bias_contrib, (N_pad, out_pad))
    # Per-expert gate columns, contiguous per expert: (E, N_pad, 1) f32.
    gate_cols = jnp.transpose(gate_p)[:, :, None]

    n_tiles = N_pad // tm
    o_tiles = out_pad // tn

    # Per-(row-tile, expert) activity flags -> SMEM via scalar prefetch.
    flags = jnp.any(gate_p.reshape(n_tiles, tm, E) != 0.0, axis=1)
    flags = flags.astype(jnp.int32).reshape(-1)                        # (n_tiles * E,)

    y = pl.pallas_call(
        moe_kernel,
        out_shape=jax.ShapeDtypeStruct((N_pad, out_pad), out_dtype),
        grid_spec=pltpu.PrefetchScalarGridSpec(
            num_scalar_prefetch=1,
            grid=(n_tiles, o_tiles, E),                                # expert (reduction) axis last
            in_specs=[
                # X tile: resident across the o / e axes of its row-tile.
                pl.BlockSpec((tm, in_dim), lambda n, o, e, flags: (n, 0)),
                # W: one expert's weight tile streamed per grid step (double-buffered).
                pl.BlockSpec((1, in_dim, tn), lambda n, o, e, flags: (e, 0, o)),
                # Gate: one expert's (tm, 1) f32 column streamed per grid step.
                pl.BlockSpec((1, tm, 1), lambda n, o, e, flags: (e, n, 0)),
                # Hoisted bias term for this output tile.
                pl.BlockSpec((tm, tn), lambda n, o, e, flags: (n, o)),
            ],
            out_specs=pl.BlockSpec((tm, tn), lambda n, o, e, flags: (n, o)),
            scratch_shapes=[pltpu.VMEM((tm, tn), jnp.float32)],        # f32 accumulator
        ),
        compiler_params=pltpu.CompilerParams(
            dimension_semantics=("parallel", "parallel", "arbitrary"),
        ),
    )(flags, Xp, Wp, gate_cols, bias_p)

    return y[:N, :out_dim]


def moe_reference(X, G, W, B, selection_size):
    """Pure-JAX reference mirroring the PyTorch forward."""
    raw_weights = jax.nn.softmax(G.astype(jnp.float32), axis=1)
    top_w, top_idx = jax.lax.top_k(raw_weights, selection_size)
    norm_w = top_w / jnp.sum(top_w, axis=1, keepdims=True)
    # expert_Y[n, s] = expert_{top_idx[n,s]}(X[n])
    expert_Y = jnp.einsum("nd,nsdo->nso", X.astype(jnp.float32),
                          W[top_idx].astype(jnp.float32)) + B[top_idx].astype(jnp.float32)
    return jnp.einsum("ns,nso->no", norm_w, expert_Y).astype(X.dtype)


if __name__ == "__main__":
    # Small shapes consistent with the module: N=6 rows, 5 experts, in_dim=3, out_dim=4, top-2.
    N, num_experts, in_dim, out_dim, selection_size = 6, 5, 3, 4, 2

    key = jax.random.PRNGKey(0)
    kx, kg, kw, kb = jax.random.split(key, 4)

    X = jax.random.normal(kx, (N, in_dim), dtype=jnp.float32)
    G = jax.random.normal(kg, (N, num_experts), dtype=jnp.float32)

    # Expert parameters (nn.Linear(in_dim, out_dim) per expert): weight (out_dim, in_dim)
    # stored pre-transposed as W[e] = weight.T -> (in_dim, out_dim).
    W = jax.random.normal(kw, (num_experts, in_dim, out_dim), dtype=jnp.float32) * 0.1
    B = jax.random.normal(kb, (num_experts, out_dim), dtype=jnp.float32) * 0.1

    Y = moe_forward(X, G, W, B, selection_size)
    Y = jax.block_until_ready(Y)

    Y_ref = moe_reference(X, G, W, B, selection_size)
    assert Y.shape == (N, out_dim)
    assert jnp.allclose(Y, Y_ref, atol=1e-5, rtol=1e-5), (Y, Y_ref)

    print("KERNEL_OK")
</pallas_src>

<mosaic_0001>
module attributes {stable_mosaic.version = 11 : i64} {
  func.func @moe_kernel(%arg0: i32, %arg1: i32, %arg2: i32, %arg3: memref<5xi32, #tpu.memory_space<smem>>, %arg4: memref<8x3xf32, #tpu.memory_space<vmem>>, %arg5: memref<1x3x4xf32, #tpu.memory_space<vmem>>, %arg6: memref<1x8x1xf32, #tpu.memory_space<vmem>>, %arg7: memref<8x4xf32, #tpu.memory_space<vmem>>, %arg8: memref<8x4xf32, #tpu.memory_space<vmem>>, %arg9: memref<8x4xf32, #tpu.memory_space<vmem>>) attributes {dimension_semantics = [#tpu.dimension_semantics<parallel>, #tpu.dimension_semantics<parallel>, #tpu.dimension_semantics<arbitrary>], iteration_bounds = array<i64: 1, 1, 5>, scalar_prefetch = 1 : i64, scratch_operands = 1 : i64, tpu.core_type = #tpu.core_type<tc>, window_params = [{transform_indices = @transform_0, window_bounds = array<i64: 8, 3>}, {transform_indices = @transform_1, window_bounds = array<i64: 1, 3, 4>}, {transform_indices = @transform_2, window_bounds = array<i64: 1, 8, 1>}, {transform_indices = @transform_3, window_bounds = array<i64: 8, 4>}, {transform_indices = @transform_4, window_bounds = array<i64: 8, 4>}]} {
    %c0_i32 = arith.constant 0 : i32
    %0 = arith.cmpi eq, %arg2, %c0_i32 : i32
    %1 = arith.extui %0 : i1 to i32
    %c0_i32_0 = arith.constant 0 : i32
    %2 = arith.cmpi ne, %1, %c0_i32_0 : i32
    scf.if %2 {
      %cst = arith.constant 0.000000e+00 : f32
      %13 = vector.broadcast %cst : f32 to vector<8x4xf32>
      %c0 = arith.constant 0 : index
      %c0_4 = arith.constant 0 : index
      %14 = vector.load %arg9[%c0, %c0_4] : memref<8x4xf32, #tpu.memory_space<vmem>>, vector<8x4xf32>
      tpu.vector_store %arg9[%c0, %c0_4], %13 {strides = array<i32>} : memref<8x4xf32, #tpu.memory_space<vmem>>, vector<8x4xf32>,
    } else {
    }
    %c5_i32 = arith.constant 5 : i32
    %3 = arith.muli %arg0, %c5_i32 : i32
    %4 = arith.addi %3, %arg2 : i32
    %5 = arith.index_cast %4 : i32 to index
    %6 = memref.load %arg3[%5] : memref<5xi32, #tpu.memory_space<smem>>
    %c0_i32_1 = arith.constant 0 : i32
    %7 = arith.cmpi ne, %6, %c0_i32_1 : i32
    %8 = arith.extui %7 : i1 to i32
    %c0_i32_2 = arith.constant 0 : i32
    %9 = arith.cmpi ne, %8, %c0_i32_2 : i32
    scf.if %9 {
      %c0 = arith.constant 0 : index
      %c0_4 = arith.constant 0 : index
      %13 = vector.load %arg4[%c0, %c0_4] : memref<8x3xf32, #tpu.memory_space<vmem>>, vector<8x3xf32>
      %c0_5 = arith.constant 0 : index
      %c0_6 = arith.constant 0 : index
      %c0_7 = arith.constant 0 : index
      %14 = vector.load %arg5[%c0_5, %c0_6, %c0_7] : memref<1x3x4xf32, #tpu.memory_space<vmem>>, vector<1x3x4xf32>
      %15 = vector.shape_cast %14 : vector<1x3x4xf32> to vector<3x4xf32>
      %cst = arith.constant dense<0.000000e+00> : vector<8x4xf32>
      %16 = tpu.matmul %13, %15, %cst {dimension_numbers = #tpu.dot_dimension_numbers<[1], [0], [0], [1], [0, 0, 1, 1], [], []>} : vector<8x3xf32>, vector<3x4xf32>, vector<8x4xf32> -> vector<8x4xf32>
      %c0_8 = arith.constant 0 : index
      %c0_9 = arith.constant 0 : index
      %17 = vector.load %arg9[%c0_8, %c0_9] : memref<8x4xf32, #tpu.memory_space<vmem>>, vector<8x4xf32>
      %c0_10 = arith.constant 0 : index
      %c0_11 = arith.constant 0 : index
      %c0_12 = arith.constant 0 : index
      %18 = vector.load %arg6[%c0_10, %c0_11, %c0_12] : memref<1x8x1xf32, #tpu.memory_space<vmem>>, vector<1x8x1xf32>
      %19 = vector.shape_cast %18 : vector<1x8x1xf32> to vector<8x1xf32>
      %20 = vector.broadcast %19 : vector<8x1xf32> to vector<8x4xf32>
      %21 = arith.mulf %20, %16 : vector<8x4xf32>
      %22 = arith.addf %17, %21 : vector<8x4xf32>
      %c0_13 = arith.constant 0 : index
      %c0_14 = arith.constant 0 : index
      %23 = vector.load %arg9[%c0_13, %c0_14] : memref<8x4xf32, #tpu.memory_space<vmem>>, vector<8x4xf32>
      tpu.vector_store %arg9[%c0_13, %c0_14], %22 {strides = array<i32>} : memref<8x4xf32, #tpu.memory_space<vmem>>, vector<8x4xf32>,
    } else {
    }
    %c4_i32 = arith.constant 4 : i32
    %10 = arith.cmpi eq, %arg2, %c4_i32 : i32
    %11 = arith.extui %10 : i1 to i32
    %c0_i32_3 = arith.constant 0 : i32
    %12 = arith.cmpi ne, %11, %c0_i32_3 : i32
    scf.if %12 {
      %c0 = arith.constant 0 : index
      %c0_4 = arith.constant 0 : index
      %13 = vector.load %arg9[%c0, %c0_4] : memref<8x4xf32, #tpu.memory_space<vmem>>, vector<8x4xf32>
      %c0_5 = arith.constant 0 : index
      %c0_6 = arith.constant 0 : index
      %14 = vector.load %arg7[%c0_5, %c0_6] : memref<8x4xf32, #tpu.memory_space<vmem>>, vector<8x4xf32>
      %15 = arith.addf %13, %14 : vector<8x4xf32>
      %c0_7 = arith.constant 0 : index
      %c0_8 = arith.constant 0 : index
      %16 = vector.load %arg8[%c0_7, %c0_8] : memref<8x4xf32, #tpu.memory_space<vmem>>, vector<8x4xf32>
      tpu.vector_store %arg8[%c0_7, %c0_8], %15 {strides = array<i32>} : memref<8x4xf32, #tpu.memory_space<vmem>>, vector<8x4xf32>,
    } else {
    }
    return
  }
  func.func @transform_0(%arg0: i32, %arg1: i32, %arg2: i32, %arg3: memref<5xi32, #tpu.memory_space<smem>>) -> (i32, i32) {
    %c0_i32 = arith.constant 0 : i32
    %c0_i32_0 = arith.constant 0 : i32
    return %arg0, %c0_i32 : i32, i32
  }
  func.func @transform_1(%arg0: i32, %arg1: i32, %arg2: i32, %arg3: memref<5xi32, #tpu.memory_space<smem>>) -> (i32, i32, i32) {
    %c0_i32 = arith.constant 0 : i32
    %c0_i32_0 = arith.constant 0 : i32
    return %arg2, %c0_i32, %arg1 : i32, i32, i32
  }
  func.func @transform_2(%arg0: i32, %arg1: i32, %arg2: i32, %arg3: memref<5xi32, #tpu.memory_space<smem>>) -> (i32, i32, i32) {
    %c0_i32 = arith.constant 0 : i32
    %c0_i32_0 = arith.constant 0 : i32
    return %arg2, %arg0, %c0_i32 : i32, i32, i32
  }
  func.func @transform_3(%arg0: i32, %arg1: i32, %arg2: i32, %arg3: memref<5xi32, #tpu.memory_space<smem>>) -> (i32, i32) {
    %c0_i32 = arith.constant 0 : i32
    return %arg0, %arg1 : i32, i32
  }
  func.func @transform_4(%arg0: i32, %arg1: i32, %arg2: i32, %arg3: memref<5xi32, #tpu.memory_space<smem>>) -> (i32, i32) {
    %c0_i32 = arith.constant 0 : i32
    return %arg0, %arg1 : i32, i32
  }
}

</mosaic_0001>

<bundles_post_ra>
// kernel: tpu_custom_call.1
= control target key start
LH: loop header
LB: loop body
LE: loop exit
PB: predicated region body
PF: predicated region fallthrough
CT: control target
= control target key end

     0   :  { %s581_s21 = smov [#allocation4]   ;;  %s666_s0 = inlined_call_operand.vmem [shape: s32[5], index: 0, kind: input, shape index: {}]   ;;  %s667_s1 = inlined_call_operand.vmem [shape: f32[8,3], index: 1, kind: input, shape index: {}]   ;;  %s668_s2 = inlined_call_operand.vmem [shape: f32[5,3,4], index: 2, kind: input, shape index: {}]   ;;  %s669_s3 = inlined_call_operand.vmem [shape: f32[5,8,1], index: 3, kind: input, shape index: {}]   ;;  %s670_s4 = inlined_call_operand.vmem [shape: f32[8,4], index: 4, kind: input, shape index: {}]   ;;  %s671_s5 = inlined_call_operand.vmem [shape: f32[8,4], index: 5, kind: output, shape index: {}]  }
   0x1   :  { %s11_s20 = sshll.u32 %s666_s0, 4  ;;  %s12_s20 = int_to_ptr.vmem [resolvable:$true] %s11_s20 }
   0x2   :  { %14 = dma.vmem_to_smem %s12_s20, 16, %s581_s21, [#allocation3] }
   0x3   :  { %567 = dma.done.wait [#allocation3], 16 }
   0x4   :  { %568 = vsyncadd [#allocation3], 4294967280 }
   0x5   :  { %17 = sfence }
   0x6   :  { %s617_s22 = smov 0   ;;  %s619_s23 = smov 0  }
   0x7   :  { %s621_s24 = smov 0  }
   0x8 LB: > { %s35_s0 = sadd.s32 1, %s575_s23  ;;  %p504_p0 = scmp.ge.s32.totalorder %s579_s24, 1  ;;  %s579_s24 = sphi %s621_s24, %s23_s24   ;;  %s575_s23 = sphi %s619_s23, %s673_s23   ;;  %s571_s22 = sphi %s617_s22, %s672_s22  }
   0x9   : > { %p36_p1 = scmp.ge.s32.totalorder %s35_s0, 5  ;;  %p233_p2 = scmp.lt.s32.totalorder %s579_s24, 6 }
   0xb   : > { %s675_s0 = smov (%p36_p1, %s35_s0), 0  ;;  %p234_p3 = pnand %p504_p0, %p233_p2 }
   0xc   : > { %p285_p4 = scmp.lt.s32.totalorder (!%p234_p3), %s571_s22, 4  ;;  %p507_p5 = scmp.ne.s32.totalorder (!%p234_p3), %s571_s22, 0 }
   0xd   : > { %237 = sbr.rel (%p234_p3) target bundleno = 184 (0xb8), region = 36 }
  0x12   : > { %s286_s25 = scalar_select %p285_p4, %s571_s22, 4 }
  0x13   : > { %316 = sbr.rel (%p507_p5) target bundleno = 26 (0x1a), region = 40 }
  0x14   : > { %s505_s26 = sshll.u32 %s286_s25, 2  ;;  %s506_s27 = sshll.u32 %s286_s25, 3 }
  0x15   : > { %s291_s30 = scalar_lea.vmem %s668_s2, %s505_s26  ;;  %s298_s8 = scalar_lea.vmem %s669_s3, %s506_s27 }
  0x18   : > { %vm317_vm0 = vcmask 31744   ;;  %v582_v0 = vmov 0.0  }
  0x19   : > { %318 = vst.msk [vmem:[#allocation2] sm:$0xff] %vm317_vm0, %v582_v0 }
  0x1a PF: > { %s321_s9 = sld [smem:[#allocation4 + %s571_s22]] }
  0x20   : > { %p508_p6 = scmp.eq.s32.totalorder %s321_s9, 0 }
  0x22   : > { %325 = sbr.rel (%p508_p6) target bundleno = 172 (0xac), region = 44 }
  0x27   : > { %v327_v1 = vld [vmem:[%s291_s30] sm:$0x7]  ;;  %vm332_vm1 = vcmask 1042432   ;;  %vm328_vm2 = vcmask 23552   ;;  %v583_v3 = vmov 0   ;;  %vm365_vm3 = vcmask 31744  }
  0x28   : > { %v326_v2 = vld [vmem:[%s667_s1] sm:$0xff]  ;;  %509 = vmatpush.msk.msra.mxu0 %vm332_vm1, %v327_v1  ;;  %542 = vset.pattern.permute.xlu0 %v583_v3 }
  0x29   : > { %v357_v4 = vld [vmem:[%s298_s8] sm:$0xff]  ;;  %510 = vmatmul.msk.f32.vlgmr.msra.gmra.mxu0 %vm328_vm2, %v326_v2 }
  0x2a   : > { %360 = vperm.xlu0 %542, %v357_v4   ;;  %v356_v7 = vld [vmem:[#allocation2] sm:$0xff] }
  0x9c   : > { %v361_v5 = vpop.permute.xlu0 %360 }
  0xa6   : > { %v353_v6 = vpop.f32.mrf.mxu0 }
  0xa7   : > { %v363_v8 = vmul.f32 %v361_v5, %v353_v6 }
  0xa9   : > { %v364_v9 = vadd.f32 %v363_v8, %v356_v7 }
  0xab   : > { %366 = vst.msk [vmem:[#allocation2] sm:$0xff] %vm365_vm3, %v364_v9 }
  0xac PF: > { %p511_p7 = scmp.ne.s32.totalorder %s571_s22, 4 }
  0xae   : > { %370 = sbr.rel (%p511_p7) target bundleno = 184 (0xb8), region = 48 }
  0xb3   : > { %v371_v10 = vld [vmem:[#allocation2] sm:$0xff]  ;;  %vm374_vm4 = vcmask 31744  }
  0xb4   : > { %v372_v11 = vld [vmem:[%s670_s4] sm:$0xff] }
  0xb5   : > { %v373_v12 = vadd.f32 %v372_v11, %v371_v10 }
  0xb7   : > { %375 = vst.msk [vmem:[%s671_s5] sm:$0xff] %vm374_vm4, %v373_v12 }
  0xb8 PF: > { %s23_s24 = sadd.s32 1, %s579_s24   ;;  %s672_s22 = smov %s575_s23 }
  0xb9   : > { %p20_p8 = scmp.ge.s32.totalorder %s23_s24, 7   ;;  %s673_s23 = smov %s675_s0 }
  0xbb   :  { %22 = sbr.rel (!%p20_p8) target bundleno = 8 (0x8), region = 87 }

</bundles_post_ra>
